<compile_context>
chip_gen: v7x
topology: tpu7x:2x2x1
jax: 0.10.0
libtpu: 0.0.40
codegen_flags: <defaults>
</compile_context>

<pallas_src>
import functools

import jax
import jax.numpy as jnp
from jax.experimental import pallas as pl
from jax.experimental.pallas import tpu as pltpu

LANE = 128  # TPU lane width; all hidden/output widths are padded to this.


# ---------------------------------------------------------------------------
# Pallas kernel: entire MLP forward for one batch tile
# ---------------------------------------------------------------------------
def mlp_kernel(x_ref,
               w_in_ref, b_in_ref,
               w_h1_ref, b_h1_ref,
               w_h2_ref, b_h2_ref,
               w_h3_ref, b_h3_ref,
               w_out_ref, b_out_ref,
               o_ref):
    f32 = jnp.float32
    bf16 = jnp.bfloat16

    x = x_ref[...]  # (TB, in_features), already bf16

    # inputL + relu                      (activationFunctions[1])
    h = jnp.dot(x, w_in_ref[...], preferred_element_type=f32) + b_in_ref[...]
    h = jnp.maximum(h, 0.0)

    # hiddenLayers[0] + relu             (hiddenLayersData[1] -> act 1)
    h = jnp.dot(h.astype(bf16), w_h1_ref[...], preferred_element_type=f32) + b_h1_ref[...]
    h = jnp.maximum(h, 0.0)

    # hiddenLayers[1] + leaky_relu(0.01) (hiddenLayersData[2] -> act 2)
    h = jnp.dot(h.astype(bf16), w_h2_ref[...], preferred_element_type=f32) + b_h2_ref[...]
    h = jnp.maximum(h, 0.01 * h)  # mul+max == leaky_relu for slope < 1

    # hiddenLayers[2] (->3, padded 128) + tanh  (hiddenLayersData[3] -> act 3)
    h = jnp.dot(h.astype(bf16), w_h3_ref[...], preferred_element_type=f32) + b_h3_ref[...]
    h = jnp.tanh(h)  # tanh(0)=0 keeps padded lanes exactly zero

    # outputL: Linear(3,1) zero-padded to (128,128) -> lane-dense (TB,128)
    # store; only column 0 carries the real result, other columns are 0.
    o_ref[...] = (jnp.dot(h.astype(bf16), w_out_ref[...],
                          preferred_element_type=f32) + b_out_ref[...])


# ---------------------------------------------------------------------------
# Wrapper
# ---------------------------------------------------------------------------
def _round_up(n, m):
    return ((n + m - 1) // m) * m


def _resident_spec(shape):
    # Whole-array block with a constant index map: block index never changes
    # across grid steps, so the parameter is DMA'd once and stays VMEM-resident.
    zeros = (0,) * len(shape)
    return pl.BlockSpec(shape, lambda i, _z=zeros: _z)


@functools.partial(jax.jit, static_argnames=("tb",))
def custom_regressor_forward(x, padded_params, *, tb=512):
    """x: (batch, in_features) f32/bf16.
    padded_params: list of 5 (W_pad[bf16, (in, 128)], b_pad[f32, (1, 128)])."""
    batch, feat = x.shape

    # Batch tiling (multiple of 128 keeps f32/bf16 sublane packing happy).
    tb = min(tb, _round_up(batch, LANE))
    grid_b = pl.cdiv(batch, tb)
    padded_batch = grid_b * tb
    if padded_batch != batch:
        x = jnp.pad(x, ((0, padded_batch - batch), (0, 0)))
    x = x.astype(jnp.bfloat16)  # halves the only batch-scaled HBM read

    flat_params = [a for pair in padded_params for a in pair]

    in_specs = [pl.BlockSpec((tb, feat), lambda i: (i, 0))]
    in_specs += [_resident_spec(a.shape) for a in flat_params]

    out_padded = pl.pallas_call(
        mlp_kernel,
        out_shape=jax.ShapeDtypeStruct((padded_batch, LANE), jnp.float32),
        grid=(grid_b,),
        in_specs=in_specs,
        out_specs=pl.BlockSpec((tb, LANE), lambda i: (i, 0)),
        compiler_params=pltpu.CompilerParams(
            # batch tiles are independent -> shard across v7x's 2 TensorCores
            dimension_semantics=("parallel",),
            # explicit budget (sized against v7x's 64 MiB VMEM; tiny here)
            vmem_limit_bytes=32 * 1024 * 1024,
        ),
    )(x, *flat_params)

    # Real result lives in column 0 of the lane-dense output slab.
    return out_padded[:batch, :1]


# ---------------------------------------------------------------------------
# Deterministic parameter init (PyTorch nn.Linear default: U(-k, k), k=1/sqrt(fan_in))
# Returns (padded-for-kernel, raw-for-reference) parameter pairs.
# ---------------------------------------------------------------------------
def init_linear(key, fan_in, fan_out, in_pad, out_pad):
    kw, kb = jax.random.split(key)
    bound = 1.0 / (fan_in ** 0.5)
    # Stored as (in, out) == PyTorch W.T so the kernel computes x @ W + b.
    w = jax.random.uniform(kw, (fan_in, fan_out), jnp.float32, -bound, bound)
    b = jax.random.uniform(kb, (fan_out,), jnp.float32, -bound, bound)

    w_pad = jnp.zeros((in_pad, out_pad), jnp.float32).at[:fan_in, :fan_out].set(w)
    b_pad = jnp.zeros((1, out_pad), jnp.float32).at[0, :fan_out].set(b)
    return (w_pad.astype(jnp.bfloat16), b_pad), (w, b.reshape(1, fan_out))


def reference_forward(x, raw_params):
    """Pure-JAX reference mirroring the kernel's numerics
    (bf16 matmul operands, f32 accumulation, f32 activations)."""
    bf16, f32 = jnp.bfloat16, jnp.float32

    def dot(a, w):
        return jnp.dot(a.astype(bf16), w.astype(bf16), preferred_element_type=f32)

    (w0, b0), (w1, b1), (w2, b2), (w3, b3), (wo, bo) = raw_params
    h = jnp.maximum(dot(x, w0) + b0, 0.0)
    h = jnp.maximum(dot(h, w1) + b1, 0.0)
    z = dot(h, w2) + b2
    h = jnp.where(z > 0.0, z, 0.01 * z)
    h = jnp.tanh(dot(h, w3) + b3)
    return dot(h, wo) + bo


if __name__ == "__main__":
    key = jax.random.PRNGKey(0)
    k_x, k0, k1, k2, k3, k4 = jax.random.split(key, 6)

    batch, in_features, hidden = 256, 16, 32   # small but multi-tile at tb=128

    x = jax.random.normal(k_x, (batch, in_features), jnp.float32)

    layer_dims = [
        (in_features, hidden, in_features, LANE),  # inputL        (16 -> 32)
        (hidden, hidden, LANE, LANE),              # hiddenLayers[0]
        (hidden, hidden, LANE, LANE),              # hiddenLayers[1]
        (hidden, 3, LANE, LANE),                   # hiddenLayers[2] (32 -> 3)
        (3, 1, LANE, LANE),                        # outputL        (3 -> 1)
    ]
    keys = [k0, k1, k2, k3, k4]
    padded_params, raw_params = [], []
    for kk, dims in zip(keys, layer_dims):
        p, r = init_linear(kk, *dims)
        padded_params.append(p)
        raw_params.append(r)

    out = custom_regressor_forward(x, padded_params, tb=128)  # grid=(2,)
    out = jax.block_until_ready(out)

    ref = reference_forward(x, raw_params)
    assert out.shape == (batch, 1), out.shape
    assert jnp.allclose(out, ref, atol=1e-3, rtol=1e-3), (
        f"mismatch vs pure-JAX reference: max|d|={jnp.max(jnp.abs(out - ref))}")

    print("KERNEL_OK")
</pallas_src>

<mosaic_0001>
module attributes {stable_mosaic.version = 11 : i64} {
  func.func @mlp_kernel(%arg0: i32, %arg1: memref<128x16xbf16, #tpu.memory_space<vmem>>, %arg2: memref<16x128xbf16, #tpu.memory_space<vmem>>, %arg3: memref<1x128xf32, #tpu.memory_space<vmem>>, %arg4: memref<128x128xbf16, #tpu.memory_space<vmem>>, %arg5: memref<1x128xf32, #tpu.memory_space<vmem>>, %arg6: memref<128x128xbf16, #tpu.memory_space<vmem>>, %arg7: memref<1x128xf32, #tpu.memory_space<vmem>>, %arg8: memref<128x128xbf16, #tpu.memory_space<vmem>>, %arg9: memref<1x128xf32, #tpu.memory_space<vmem>>, %arg10: memref<128x128xbf16, #tpu.memory_space<vmem>>, %arg11: memref<1x128xf32, #tpu.memory_space<vmem>>, %arg12: memref<128x128xf32, #tpu.memory_space<vmem>>) attributes {dimension_semantics = [#tpu.dimension_semantics<parallel>], iteration_bounds = array<i64: 2>, scalar_prefetch = 0 : i64, scratch_operands = 0 : i64, tpu.core_type = #tpu.core_type<tc>, window_params = [{transform_indices = @transform_0, window_bounds = array<i64: 128, 16>}, {pipeline_mode = #tpu.pipeline_mode<synchronous>, transform_indices = @transform_1, window_bounds = array<i64: 16, 128>}, {pipeline_mode = #tpu.pipeline_mode<synchronous>, transform_indices = @transform_2, window_bounds = array<i64: 1, 128>}, {pipeline_mode = #tpu.pipeline_mode<synchronous>, transform_indices = @transform_3, window_bounds = array<i64: 128, 128>}, {pipeline_mode = #tpu.pipeline_mode<synchronous>, transform_indices = @transform_4, window_bounds = array<i64: 1, 128>}, {pipeline_mode = #tpu.pipeline_mode<synchronous>, transform_indices = @transform_5, window_bounds = array<i64: 128, 128>}, {pipeline_mode = #tpu.pipeline_mode<synchronous>, transform_indices = @transform_6, window_bounds = array<i64: 1, 128>}, {pipeline_mode = #tpu.pipeline_mode<synchronous>, transform_indices = @transform_7, window_bounds = array<i64: 128, 128>}, {pipeline_mode = #tpu.pipeline_mode<synchronous>, transform_indices = @transform_8, window_bounds = array<i64: 1, 128>}, {pipeline_mode = #tpu.pipeline_mode<synchronous>, transform_indices = @transform_9, window_bounds = array<i64: 128, 128>}, {pipeline_mode = #tpu.pipeline_mode<synchronous>, transform_indices = @transform_10, window_bounds = array<i64: 1, 128>}, {transform_indices = @transform_11, window_bounds = array<i64: 128, 128>}]} {
    %c0 = arith.constant 0 : index
    %c0_0 = arith.constant 0 : index
    %0 = vector.load %arg1[%c0, %c0_0] : memref<128x16xbf16, #tpu.memory_space<vmem>>, vector<128x16xbf16>
    %c0_1 = arith.constant 0 : index
    %c0_2 = arith.constant 0 : index
    %1 = vector.load %arg2[%c0_1, %c0_2] : memref<16x128xbf16, #tpu.memory_space<vmem>>, vector<16x128xbf16>
    %cst = arith.constant dense<0.000000e+00> : vector<128x128xf32>
    %2 = tpu.matmul %0, %1, %cst {dimension_numbers = #tpu.dot_dimension_numbers<[1], [0], [0], [1], [0, 0, 1, 1], [], []>} : vector<128x16xbf16>, vector<16x128xbf16>, vector<128x128xf32> -> vector<128x128xf32>
    %c0_3 = arith.constant 0 : index
    %c0_4 = arith.constant 0 : index
    %3 = vector.load %arg3[%c0_3, %c0_4] : memref<1x128xf32, #tpu.memory_space<vmem>>, vector<1x128xf32>
    %4 = vector.broadcast %3 : vector<1x128xf32> to vector<128x128xf32>
    %5 = arith.addf %2, %4 : vector<128x128xf32>
    %cst_5 = arith.constant 0.000000e+00 : f32
    %6 = vector.broadcast %cst_5 : f32 to vector<128x128xf32>
    %7 = arith.maximumf %5, %6 : vector<128x128xf32>
    %8 = arith.truncf %7 : vector<128x128xf32> to vector<128x128xbf16>
    %c0_6 = arith.constant 0 : index
    %c0_7 = arith.constant 0 : index
    %9 = vector.load %arg4[%c0_6, %c0_7] : memref<128x128xbf16, #tpu.memory_space<vmem>>, vector<128x128xbf16>
    %cst_8 = arith.constant dense<0.000000e+00> : vector<128x128xf32>
    %10 = tpu.matmul %8, %9, %cst_8 {dimension_numbers = #tpu.dot_dimension_numbers<[1], [0], [0], [1], [0, 0, 1, 1], [], []>} : vector<128x128xbf16>, vector<128x128xbf16>, vector<128x128xf32> -> vector<128x128xf32>
    %c0_9 = arith.constant 0 : index
    %c0_10 = arith.constant 0 : index
    %11 = vector.load %arg5[%c0_9, %c0_10] : memref<1x128xf32, #tpu.memory_space<vmem>>, vector<1x128xf32>
    %12 = vector.broadcast %11 : vector<1x128xf32> to vector<128x128xf32>
    %13 = arith.addf %10, %12 : vector<128x128xf32>
    %cst_11 = arith.constant 0.000000e+00 : f32
    %14 = vector.broadcast %cst_11 : f32 to vector<128x128xf32>
    %15 = arith.maximumf %13, %14 : vector<128x128xf32>
    %16 = arith.truncf %15 : vector<128x128xf32> to vector<128x128xbf16>
    %c0_12 = arith.constant 0 : index
    %c0_13 = arith.constant 0 : index
    %17 = vector.load %arg6[%c0_12, %c0_13] : memref<128x128xbf16, #tpu.memory_space<vmem>>, vector<128x128xbf16>
    %cst_14 = arith.constant dense<0.000000e+00> : vector<128x128xf32>
    %18 = tpu.matmul %16, %17, %cst_14 {dimension_numbers = #tpu.dot_dimension_numbers<[1], [0], [0], [1], [0, 0, 1, 1], [], []>} : vector<128x128xbf16>, vector<128x128xbf16>, vector<128x128xf32> -> vector<128x128xf32>
    %c0_15 = arith.constant 0 : index
    %c0_16 = arith.constant 0 : index
    %19 = vector.load %arg7[%c0_15, %c0_16] : memref<1x128xf32, #tpu.memory_space<vmem>>, vector<1x128xf32>
    %20 = vector.broadcast %19 : vector<1x128xf32> to vector<128x128xf32>
    %21 = arith.addf %18, %20 : vector<128x128xf32>
    %cst_17 = arith.constant 0.00999999977 : f32
    %22 = vector.broadcast %cst_17 : f32 to vector<128x128xf32>
    %23 = arith.mulf %22, %21 : vector<128x128xf32>
    %24 = arith.maximumf %21, %23 : vector<128x128xf32>
    %25 = arith.truncf %24 : vector<128x128xf32> to vector<128x128xbf16>
    %c0_18 = arith.constant 0 : index
    %c0_19 = arith.constant 0 : index
    %26 = vector.load %arg8[%c0_18, %c0_19] : memref<128x128xbf16, #tpu.memory_space<vmem>>, vector<128x128xbf16>
    %cst_20 = arith.constant dense<0.000000e+00> : vector<128x128xf32>
    %27 = tpu.matmul %25, %26, %cst_20 {dimension_numbers = #tpu.dot_dimension_numbers<[1], [0], [0], [1], [0, 0, 1, 1], [], []>} : vector<128x128xbf16>, vector<128x128xbf16>, vector<128x128xf32> -> vector<128x128xf32>
    %c0_21 = arith.constant 0 : index
    %c0_22 = arith.constant 0 : index
    %28 = vector.load %arg9[%c0_21, %c0_22] : memref<1x128xf32, #tpu.memory_space<vmem>>, vector<1x128xf32>
    %29 = vector.broadcast %28 : vector<1x128xf32> to vector<128x128xf32>
    %30 = arith.addf %27, %29 : vector<128x128xf32>
    %31 = math.tanh %30 : vector<128x128xf32>
    %32 = arith.truncf %31 : vector<128x128xf32> to vector<128x128xbf16>
    %c0_23 = arith.constant 0 : index
    %c0_24 = arith.constant 0 : index
    %33 = vector.load %arg10[%c0_23, %c0_24] : memref<128x128xbf16, #tpu.memory_space<vmem>>, vector<128x128xbf16>
    %cst_25 = arith.constant dense<0.000000e+00> : vector<128x128xf32>
    %34 = tpu.matmul %32, %33, %cst_25 {dimension_numbers = #tpu.dot_dimension_numbers<[1], [0], [0], [1], [0, 0, 1, 1], [], []>} : vector<128x128xbf16>, vector<128x128xbf16>, vector<128x128xf32> -> vector<128x128xf32>
    %c0_26 = arith.constant 0 : index
    %c0_27 = arith.constant 0 : index
    %35 = vector.load %arg11[%c0_26, %c0_27] : memref<1x128xf32, #tpu.memory_space<vmem>>, vector<1x128xf32>
    %36 = vector.broadcast %35 : vector<1x128xf32> to vector<128x128xf32>
    %37 = arith.addf %34, %36 : vector<128x128xf32>
    %c0_28 = arith.constant 0 : index
    %c0_29 = arith.constant 0 : index
    %38 = vector.load %arg12[%c0_28, %c0_29] : memref<128x128xf32, #tpu.memory_space<vmem>>, vector<128x128xf32>
    tpu.vector_store %arg12[%c0_28, %c0_29], %37 {strides = array<i32>} : memref<128x128xf32, #tpu.memory_space<vmem>>, vector<128x128xf32>,
    return
  }
  func.func @transform_0(%arg0: i32) -> (i32, i32) {
    %c0_i32 = arith.constant 0 : i32
    %c0_i32_0 = arith.constant 0 : i32
    return %arg0, %c0_i32 : i32, i32
  }
  func.func @transform_1(%arg0: i32) -> (i32, i32) {
    %c0_i32 = arith.constant 0 : i32
    %c0_i32_0 = arith.constant 0 : i32
    %c0_i32_1 = arith.constant 0 : i32
    return %c0_i32, %c0_i32_0 : i32, i32
  }
  func.func @transform_2(%arg0: i32) -> (i32, i32) {
    %c0_i32 = arith.constant 0 : i32
    %c0_i32_0 = arith.constant 0 : i32
    %c0_i32_1 = arith.constant 0 : i32
    return %c0_i32, %c0_i32_0 : i32, i32
  }
  func.func @transform_3(%arg0: i32) -> (i32, i32) {
    %c0_i32 = arith.constant 0 : i32
    %c0_i32_0 = arith.constant 0 : i32
    %c0_i32_1 = arith.constant 0 : i32
    return %c0_i32, %c0_i32_0 : i32, i32
  }
  func.func @transform_4(%arg0: i32) -> (i32, i32) {
    %c0_i32 = arith.constant 0 : i32
    %c0_i32_0 = arith.constant 0 : i32
    %c0_i32_1 = arith.constant 0 : i32
    return %c0_i32, %c0_i32_0 : i32, i32
  }
  func.func @transform_5(%arg0: i32) -> (i32, i32) {
    %c0_i32 = arith.constant 0 : i32
    %c0_i32_0 = arith.constant 0 : i32
    %c0_i32_1 = arith.constant 0 : i32
    return %c0_i32, %c0_i32_0 : i32, i32
  }
  func.func @transform_6(%arg0: i32) -> (i32, i32) {
    %c0_i32 = arith.constant 0 : i32
    %c0_i32_0 = arith.constant 0 : i32
    %c0_i32_1 = arith.constant 0 : i32
    return %c0_i32, %c0_i32_0 : i32, i32
  }
  func.func @transform_7(%arg0: i32) -> (i32, i32) {
    %c0_i32 = arith.constant 0 : i32
    %c0_i32_0 = arith.constant 0 : i32
    %c0_i32_1 = arith.constant 0 : i32
    return %c0_i32, %c0_i32_0 : i32, i32
  }
  func.func @transform_8(%arg0: i32) -> (i32, i32) {
    %c0_i32 = arith.constant 0 : i32
    %c0_i32_0 = arith.constant 0 : i32
    %c0_i32_1 = arith.constant 0 : i32
    return %c0_i32, %c0_i32_0 : i32, i32
  }
  func.func @transform_9(%arg0: i32) -> (i32, i32) {
    %c0_i32 = arith.constant 0 : i32
    %c0_i32_0 = arith.constant 0 : i32
    %c0_i32_1 = arith.constant 0 : i32
    return %c0_i32, %c0_i32_0 : i32, i32
  }
  func.func @transform_10(%arg0: i32) -> (i32, i32) {
    %c0_i32 = arith.constant 0 : i32
    %c0_i32_0 = arith.constant 0 : i32
    %c0_i32_1 = arith.constant 0 : i32
    return %c0_i32, %c0_i32_0 : i32, i32
  }
  func.func @transform_11(%arg0: i32) -> (i32, i32) {
    %c0_i32 = arith.constant 0 : i32
    %c0_i32_0 = arith.constant 0 : i32
    return %arg0, %c0_i32 : i32, i32
  }
}

</mosaic_0001>

<bundles_post_ra>
// kernel: custom_regressor_forward.1
= control target key start
LH: loop header
LB: loop body
LE: loop exit
PB: predicated region body
PF: predicated region fallthrough
CT: control target
= control target key end

     0   :  { %16 = vsyncpa [#allocation3], 0  ;;  %s2261_s0 = inlined_call_operand.vmem [shape: bf16[256,16], index: 0, kind: input, shape index: {}]   ;;  %s2262_s1 = inlined_call_operand.hbm [shape: bf16[16,128], index: 1, kind: input, shape index: {}]   ;;  %s2263_s2 = inlined_call_operand.vmem [shape: f32[1,128], index: 2, kind: input, shape index: {}]   ;;  %s2264_s3 = inlined_call_operand.vmem [shape: bf16[128,128], index: 3, kind: input, shape index: {}]   ;;  %s2265_s4 = inlined_call_operand.vmem [shape: f32[1,128], index: 4, kind: input, shape index: {}]   ;;  %s2266_s5 = inlined_call_operand.vmem [shape: bf16[128,128], index: 5, kind: input, shape index: {}]   ;;  %s2267_s6 = inlined_call_operand.vmem [shape: f32[1,128], index: 6, kind: input, shape index: {}]   ;;  %s2268_s7 = inlined_call_operand.vmem [shape: bf16[128,128], index: 7, kind: input, shape index: {}]   ;;  %s2269_s8 = inlined_call_operand.vmem [shape: f32[1,128], index: 8, kind: input, shape index: {}]   ;;  %s2270_s9 = inlined_call_operand.hbm [shape: bf16[128,128], index: 9, kind: input, shape index: {}]   ;;  %s2271_s10 = inlined_call_operand.vmem [shape: f32[1,128], index: 10, kind: input, shape index: {}]   ;;  %s2272_s11 = inlined_call_operand.vmem [shape: f32[256,128], index: 11, kind: output, shape index: {}]  }
   0x1   :  { %17 = vsyncpa [#allocation5], 0  ;;  %s2020_s17 = smov 0  }
   0x2 LB: > { %s1492_s18 = sadd.s32 4294967295, %s1954_s17   ;;  %p1494_p0 = scmp.ge.s32.totalorder %s1954_s17, 1  ;;  %s1954_s17 = sphi %s2020_s17, %s23_s17  }
   0x3   : > { %p290_p1 = scmp.lt.s32.totalorder %s1954_s17, 3  ;;  %s1956_s19 = smov [#allocation2]  }
   0x4   : > { %s302_s20 = sshll.u32 %s1956_s19, 4  ;;  %p2034_p3 = scmp.eq.s32.totalorder %s1492_s18, 0  ;;  %s303_s20 = int_to_ptr.vmem [resolvable:$true] %s302_s20 }
   0x5   : > { %p2028_p2 = pnand %p1494_p0, %p290_p1  ;;  %s1957_s23 = smov [#allocation4]  }
   0x6   : > { %s2277_s22 = scalar_select %p2034_p3, 1, 0 }
   0x7   : > { %s2276_s21 = scalar_select %p2028_p2, 1, 0 }
   0x8   : > { %p1788_p4 = pneg %p2028_p2  ;;  %s336_s24 = sshll.u32 %s1957_s23, 4  ;;  %s2046_s24 = int_to_ptr.vmem [resolvable:$true] %s336_s24 }
   0x9   : > { %s1884_s28 = scalar_lea.hbm %s2262_s1, 128 }
   0xa   : > { %p2042_p5 = pnand %p2034_p3, %p1788_p4  ;;  %p1885_p6 = scmp.ne.s32.totalorder %s2262_s1, %s1884_s28 }
   0xb   : > { %p1891_p10 = scmp.lt.u32.totalorder %s1884_s28, %s2262_s1 }
   0xc   : > { %p1886_p7 = pneg %p2042_p5 }
   0xe   : > { %p1887_p8 = pnand %p1886_p7, %p1885_p6 }
  0x10   : > { %p1888_p9 = pneg %p1887_p8 }
  0x12   : > { %p1893_p11 = pnand %p1891_p10, %p1888_p9 }
  0x14   : > { %1896 = shalt.err (!%p1893_p11)
}
  0x15   : > { %s1897_s14 = scalar_lea.vmem %s303_s20, 128  ;;  %p1905_p1 = scmp.lt.s32.totalorder %s303_s20, %s303_s20 }
  0x16   : > { %p1898_p12 = scmp.ne.s32.totalorder %s303_s20, %s1897_s14  ;;  %p1906_p4 = scmp.lt.s32.totalorder %s1897_s14, %s1897_s14 }
  0x18   : > { %p1900_p13 = pnand %p1898_p12, %p1886_p7  ;;  %p1907_p3 = por %p1906_p4, %p1905_p1 }
  0x1a   : > { %p1901_p0 = pneg %p1900_p13 }
  0x1c   : > { %p1908_p2 = pnand %p1907_p3, %p1901_p0 }
  0x1e   : > { %1911 = shalt.err (!%p1908_p2)
}
  0x1f   : > { %s1958_s15 = smov 64   ;;  %s1959_s16 = smov 4  }
  0x20   : > { %1791 = dma.hbm_to_vmem [thread:$0]  (!%p2042_p5), %s2262_s1, 128, %s303_s20, [#allocation3], %s1958_s15, %s1958_s15, %s1959_s16  }
  0x21   : > { %s1912_s28 = scalar_lea.hbm %s2270_s9, 1024 }
  0x22   : > { %p1913_p6 = scmp.ne.s32.totalorder %s2270_s9, %s1912_s28  ;;  %p1919_p8 = scmp.lt.u32.totalorder %s1912_s28, %s2270_s9 }
  0x24   : > { %p1915_p2 = pnand %p1913_p6, %p1886_p7 }
  0x26   : > { %p1916_p3 = pneg %p1915_p2 }
  0x28   : > { %p1921_p9 = pnand %p1919_p8, %p1916_p3 }
  0x2a   : > { %1924 = shalt.err (!%p1921_p9)
}
  0x2b   : > { %s1925_s20 = scalar_lea.vmem %s2046_s24, 1024  ;;  %p1933_p13 = scmp.lt.s32.totalorder %s2046_s24, %s2046_s24 }
  0x2c   : > { %p1926_p10 = scmp.ne.s32.totalorder %s2046_s24, %s1925_s20  ;;  %p1934_p0 = scmp.lt.s32.totalorder %s1925_s20, %s1925_s20 }
  0x2e   : > { %p1928_p11 = pnand %p1926_p10, %p1886_p7  ;;  %p1935_p1 = por %p1934_p0, %p1933_p13 }
  0x30   : > { %p1929_p12 = pneg %p1928_p11 }
  0x32   : > { %p1936_p4 = pnand %p1935_p1, %p1929_p12 }
  0x34   : > { %1939 = shalt.err (!%p1936_p4)
}
  0x35   : > { %1794 = dma.hbm_to_vmem [thread:$0]  (!%p2042_p5), %s2270_s9, 1024, %s2046_s24, [#allocation5], %s1958_s15, %s1958_s15, %s1959_s16  }
  0x36   : > { %p2279_p6 = scmp.ne.s32.totalorder %s2276_s21, 0 }
  0x37   : > { %p2280_p2 = scmp.ne.s32.totalorder (!%p2279_p6), %s2277_s22, 0 }
  0x38   : > { %364 = sbr.rel (%p2279_p6) target bundleno = 1215 (0x4bf), region = 64 }
  0x3f   : > { %1945 = dma.done.wait (%p2280_p2), [#allocation3], 128  }
  0x40   : > { %1947 = vsyncadd (%p2280_p2), [#allocation3], 4294967168 }
  0x41   : > { %1949 = dma.done.wait (%p2280_p2), [#allocation5], 1024  }
  0x42   : > { %1951 = vsyncadd (%p2280_p2), [#allocation5], 4294966272  ;;  %s1501_s25 = sshll.u32 %s1492_s18, 4  ;;  %v1811_v0 = vld [vmem:[#allocation2] sm:$0xff]   ;;  %vm492_vm0 = vcmask 130048   ;;  %v1821_v6 = vld [vmem:[%s2264_s3 + $0x8] sm:$0xff]  }
  0x43   : > { %p409_p7 = scmp.lt.s32.totalorder %s1501_s25, 31  ;;  %1634 = vmatprep.subr.bf16.mxu0 %v1811_v0  ;;  %v1820_v5 = vld [vmem:[%s2264_s3] sm:$0xff]   ;;  %v1822_v8 = vld [vmem:[%s2264_s3 + $0x10] sm:$0xff]   ;;  %v1823_v9 = vld [vmem:[%s2264_s3 + $0x18] sm:$0xff]  }
  0x44   : > { %1635 = vmatpush3.bf16.msra.mxu0 %v1811_v0  ;;  %1652 = vmatprep.subr.bf16.mxu1 %v1820_v5  ;;  %v1824_v12 = vld [vmem:[%s2264_s3 + $0x20] sm:$0xff]   ;;  %v1825_v13 = vld [vmem:[%s2264_s3 + $0x28] sm:$0xff]   ;;  %v1826_v15 = vld [vmem:[%s2264_s3 + $0x30] sm:$0xff]  }
  0x45   : > { %s2282_s25 = smov (!%p409_p7, %s1501_s25), 31  ;;  %1653 = vmatpush3.bf16.msra.mxu1 %v1820_v5  ;;  %v1827_v16 = vld [vmem:[%s2264_s3 + $0x38] sm:$0xff]   ;;  %v1828_v17 = vld [vmem:[%s2266_s5] sm:$0xff]   ;;  %v1829_v18 = vld [vmem:[%s2266_s5 + $0x8] sm:$0xff]  }
  0x46   : > { %s1502_s21 = sshll.u32 %s2282_s25, 2  ;;  %1654 = vmatprep.subr.bf16.mxu1 %v1821_v6  ;;  %1684 = vmatprep.subr.bf16.mxu0 %v1828_v17  ;;  %v1830_v19 = vld [vmem:[%s2266_s5 + $0x10] sm:$0xff]   ;;  %v1831_v20 = vld [vmem:[%s2266_s5 + $0x18] sm:$0xff]   ;;  %v1832_v21 = vld [vmem:[%s2266_s5 + $0x20] sm:$0xff]   ;;  %s1504_s28 = sshll.u32 %s2282_s25, 3 }
  0x47   : > { %s2113_s16 = scalar_lea.vmem %s2261_s0, %s1502_s21  ;;  %v1833_v22 = vld [vmem:[%s2266_s5 + $0x28] sm:$0xff]   ;;  %v1505_v23 = vld [vmem:[%s2263_s2] ss:$0 sm:$0xff]  ;;  %s2240_s20 = scalar_lea.vmem %s2272_s11, %s1504_s28 }
  0x48   : > { %v1812_v1 = vld [vmem:[%s2113_s16] sm:$0xff]   ;;  %v1813_v2 = vld [vmem:[%s2113_s16 + $0x8] sm:$0xff]   ;;  %v1814_v3 = vld [vmem:[%s2113_s16 + $0x10] sm:$0xff]  }
  0x49   : > { %1636 = vmatprep.mubr.msk.bf16.mxu0 %vm492_vm0, %v1812_v1  ;;  %v1815_v4 = vld [vmem:[%s2113_s16 + $0x18] sm:$0xff]   ;;  %v1816_v7 = vld [vmem:[%s2113_s16 + $0x20] sm:$0xff]   ;;  %v1817_v10 = vld [vmem:[%s2113_s16 + $0x28] sm:$0xff]   ;;  %1655 = vmatpush3.bf16.msra.mxu1 %v1821_v6 }
  0x4a   : > { %1637 = vmatmul.mubr.msk.bf16.vlgmr.msra.gmra.mrb[0].mxu0 %vm492_vm0, %v1813_v2  ;;  %v1818_v11 = vld [vmem:[%s2113_s16 + $0x30] sm:$0xff]   ;;  %1656 = vmatprep.subr.bf16.mxu1 %v1822_v8  ;;  %v1819_v14 = vld [vmem:[%s2113_s16 + $0x38] sm:$0xff]  }
  0x4b   : > { %1640 = vmatprep.mubr.msk.bf16.mxu0 %vm492_vm0, %v1814_v3  ;;  %1685 = vmatpush3.bf16.msra.mxu0 %v1828_v17  ;;  %v1835_v17 = vld [vmem:[%s2266_s5 + $0x38] sm:$0xff]  }
  0x4c   : > { %1686 = vmatprep.subr.bf16.mxu0 %v1829_v18 }
  0x4d   : > { %1657 = vmatpush3.bf16.msra.mxu1 %v1822_v8 }
  0x4e   : > { %1658 = vmatprep.subr.bf16.mxu1 %v1823_v9 }
  0x4f   : > { %1687 = vmatpush3.bf16.msra.mxu0 %v1829_v18  ;;  %v1836_v18 = vld [vmem:[%s2268_s7] sm:$0xff]  }
  0x50   : > { %1688 = vmatprep.subr.bf16.mxu0 %v1830_v19 }
  0x51   : > { %1659 = vmatpush3.bf16.msra.mxu1 %v1823_v9 }
  0x52   : > { %1641 = vmatmul.mubr.msk.bf16.gmra.mrb[4].mxu0 %vm492_vm0, %v1815_v4  ;;  %1660 = vmatprep.subr.bf16.mxu1 %v1824_v12 }
  0x53   : > { %1644 = vmatprep.mubr.msk.bf16.mxu0 %vm492_vm0, %v1816_v7  ;;  %1689 = vmatpush3.bf16.msra.mxu0 %v1830_v19  ;;  %v1837_v19 = vld [vmem:[%s2268_s7 + $0x8] sm:$0xff]  }
  0x54   : > { %1690 = vmatprep.subr.bf16.mxu0 %v1831_v20 }
  0x55   : > { %1661 = vmatpush3.bf16.msra.mxu1 %v1824_v12 }
  0x56   : > { %1662 = vmatprep.subr.bf16.mxu1 %v1825_v13 }
  0x57   : > { %1691 = vmatpush3.bf16.msra.mxu0 %v1831_v20  ;;  %v1838_v20 = vld [vmem:[%s2268_s7 + $0x10] sm:$0xff]  }
  0x58   : > { %1692 = vmatprep.subr.bf16.mxu0 %v1832_v21 }
  0x59   : > { %1663 = vmatpush3.bf16.msra.mxu1 %v1825_v13 }
  0x5a   : > { %1645 = vmatmul.mubr.msk.bf16.gmra.mrb[8].mxu0 %vm492_vm0, %v1817_v10  ;;  %1664 = vmatprep.subr.bf16.mxu1 %v1826_v15 }
  0x5b   : > { %1648 = vmatprep.mubr.msk.bf16.mxu0 %vm492_vm0, %v1818_v11  ;;  %1693 = vmatpush3.bf16.msra.mxu0 %v1832_v21  ;;  %v1839_v21 = vld [vmem:[%s2268_s7 + $0x18] sm:$0xff]  }
  0x5c   : > { %1694 = vmatprep.subr.bf16.mxu0 %v1833_v22 }
  0x5d   : > { %1665 = vmatpush3.bf16.msra.mxu1 %v1826_v15 }
  0x5e   : > { %1666 = vmatprep.subr.bf16.mxu1 %v1827_v16 }
  0x5f   : > { %1695 = vmatpush3.bf16.msra.mxu0 %v1833_v22  ;;  %v1840_v22 = vld [vmem:[%s2268_s7 + $0x20] sm:$0xff]  }
  0x61   : > { %1667 = vmatpush3.bf16.msra.mxu1 %v1827_v16  ;;  %v1834_v16 = vld [vmem:[%s2266_s5 + $0x30] sm:$0xff]  }
  0x62   : > { %1649 = vmatmul.mubr.msk.bf16.gmra.mrb[12].mxu0 %vm492_vm0, %v1819_v14  ;;  %1696 = vmatprep.subr.bf16.mxu0 %v1834_v16 }
  0x63   : > { %1697 = vmatpush3.bf16.msra.mxu0 %v1834_v16  ;;  %1716 = vmatprep.subr.bf16.mxu1 %v1836_v18  ;;  %v1841_v16 = vld [vmem:[%s2268_s7 + $0x28] sm:$0xff]  }
  0x64   : > { %1698 = vmatprep.subr.bf16.mxu0 %v1835_v17 }
  0x67   : > { %1699 = vmatpush3.bf16.msra.mxu0 %v1835_v17  ;;  %v1842_v17 = vld [vmem:[%s2268_s7 + $0x30] sm:$0xff]  }
 0x11d   : > { %v1638_v24 = vpop.f32.mrb[0].mxu0 }
 0x11e   : > { %v560_v25 = vadd.f32 %v1638_v24, %v1505_v23  ;;  %v551_v26 = vpop.f32.mrb[1].mxu0 }
 0x11f   : > { %v552_v27 = vadd.f32 %v1505_v23, %v551_v26  ;;  %v1639_v28 = vpop.f32.mrb[2].mxu0 }
 0x120   : > { %v563_v29 = vadd.f32 %v1639_v28, %v1505_v23  ;;  %v554_v30 = vpop.f32.mrb[3].mxu0  ;;  %v616_v32 = vmax.f32 %v560_v25, 0.0 }
 0x121   : > { %v555_v31 = vadd.f32 %v1505_v23, %v554_v30  ;;  %v614_v34 = vmax.f32 %v552_v27, 0.0 }
 0x122   : > { %v617_v33 = vmax.f32 %v563_v29, 0.0 }
 0x123   : > { %v615_v35 = vmax.f32 %v555_v31, 0.0 }
 0x124   : > { %v631_v36 = vpack.c.bf16 %v617_v33, %v616_v32 }
 0x125   : > { %v1642_v37 = vpop.f32.mrb[4].mxu0  ;;  %v630_v38 = vpack.c.bf16 %v615_v35, %v614_v34 }
 0x126   : > { %v576_v39 = vadd.f32 %v1642_v37, %v1505_v23  ;;  %v567_v40 = vpop.f32.mrb[5].mxu0 }
 0x127   : > { %v568_v41 = vadd.f32 %v1505_v23, %v567_v40  ;;  %v1643_v42 = vpop.f32.mrb[6].mxu0  ;;  %1668 = vmatprep.mubr.bf16.mxu1 %v630_v38 }
 0x128   : > { %v579_v43 = vadd.f32 %v1643_v42, %v1505_v23  ;;  %v570_v44 = vpop.f32.mrb[7].mxu0  ;;  %1669 = vmatmul.mubr.bf16.vlgmr.msra.gmra.mrb[0].mxu1 %v631_v36  ;;  %v620_v46 = vmax.f32 %v576_v39, 0.0 }
 0x129   : > { %v571_v45 = vadd.f32 %v1505_v23, %v570_v44  ;;  %v618_v48 = vmax.f32 %v568_v41, 0.0  ;;  %1717 = vmatpush3.bf16.msra.mxu1 %v1836_v18  ;;  %v1843_v18 = vld [vmem:[%s2268_s7 + $0x38] sm:$0xff]  }
 0x12a   : > { %v621_v47 = vmax.f32 %v579_v43, 0.0  ;;  %1718 = vmatprep.subr.bf16.mxu1 %v1837_v19 }
 0x12b   : > { %v619_v49 = vmax.f32 %v571_v45, 0.0 }
 0x12c   : > { %v633_v50 = vpack.c.bf16 %v621_v47, %v620_v46 }
 0x12d   : > { %v632_v51 = vpack.c.bf16 %v619_v49, %v618_v48  ;;  %v1646_v52 = vpop.f32.mrb[8].mxu0  ;;  %1719 = vmatpush3.bf16.msra.mxu1 %v1837_v19  ;;  %v1844_v19 = vld [vmem:[#allocation4] sm:$0xff]  }
 0x12e   : > { %v592_v53 = vadd.f32 %v1646_v52, %v1505_v23  ;;  %v583_v54 = vpop.f32.mrb[9].mxu0  ;;  %1720 = vmatprep.subr.bf16.mxu1 %v1838_v20  ;;  %1748 = vmatprep.subr.bf16.mxu0 %v1844_v19 }
 0x12f   : > { %v584_v55 = vadd.f32 %v1505_v23, %v583_v54  ;;  %v1647_v56 = vpop.f32.mrb[10].mxu0  ;;  %1672 = vmatprep.mubr.bf16.mxu1 %v632_v51 }
 0x130   : > { %v595_v57 = vadd.f32 %v1647_v56, %v1505_v23  ;;  %v586_v58 = vpop.f32.mrb[11].mxu0  ;;  %1673 = vmatmul.mubr.bf16.gmra.mrb[4].mxu1 %v633_v50  ;;  %v624_v60 = vmax.f32 %v592_v53, 0.0 }
 0x131   : > { %v587_v59 = vadd.f32 %v1505_v23, %v586_v58  ;;  %v622_v62 = vmax.f32 %v584_v55, 0.0  ;;  %1721 = vmatpush3.bf16.msra.mxu1 %v1838_v20  ;;  %v1845_v20 = vld [vmem:[#allocation4 + $0x8] sm:$0xff]  }
 0x132   : > { %v625_v61 = vmax.f32 %v595_v57, 0.0  ;;  %1722 = vmatprep.subr.bf16.mxu1 %v1839_v21 }
 0x133   : > { %v623_v63 = vmax.f32 %v587_v59, 0.0 }
 0x134   : > { %v635_v0 = vpack.c.bf16 %v625_v61, %v624_v60 }
 0x135   : > { %v634_v1 = vpack.c.bf16 %v623_v63, %v622_v62  ;;  %v1650_v2 = vpop.f32.mrb[12].mxu0  ;;  %1723 = vmatpush3.bf16.msra.mxu1 %v1839_v21  ;;  %v1846_v21 = vld [vmem:[#allocation4 + $0x10] sm:$0xff]  }
 0x136   : > { %v608_v3 = vadd.f32 %v1650_v2, %v1505_v23  ;;  %v599_v4 = vpop.f32.mrb[13].mxu0  ;;  %1724 = vmatprep.subr.bf16.mxu1 %v1840_v22 }
 0x137   : > { %v600_v5 = vadd.f32 %v1505_v23, %v599_v4  ;;  %v1651_v6 = vpop.f32.mrb[14].mxu0  ;;  %1676 = vmatprep.mubr.bf16.mxu1 %v634_v1 }
 0x138   : > { %v611_v7 = vadd.f32 %v1651_v6, %v1505_v23  ;;  %v602_v8 = vpop.f32.mrb[15].mxu0  ;;  %1677 = vmatmul.mubr.bf16.gmra.mrb[8].mxu1 %v635_v0  ;;  %v628_v10 = vmax.f32 %v608_v3, 0.0 }
 0x139   : > { %v603_v9 = vadd.f32 %v1505_v23, %v602_v8  ;;  %v626_v12 = vmax.f32 %v600_v5, 0.0  ;;  %1725 = vmatpush3.bf16.msra.mxu1 %v1840_v22  ;;  %v1523_v23 = vld [vmem:[%s2265_s4] ss:$0 sm:$0xff] }
 0x13a   : > { %v629_v11 = vmax.f32 %v611_v7, 0.0  ;;  %1726 = vmatprep.subr.bf16.mxu1 %v1841_v16  ;;  %v1847_v22 = vld [vmem:[#allocation4 + $0x18] sm:$0xff]  }
 0x13b   : > { %v627_v13 = vmax.f32 %v603_v9, 0.0 }
 0x13c   : > { %v637_v14 = vpack.c.bf16 %v629_v11, %v628_v10 }
 0x13d   : > { %v636_v15 = vpack.c.bf16 %v627_v13, %v626_v12  ;;  %1727 = vmatpush3.bf16.msra.mxu1 %v1841_v16 }
 0x13e   : > { %1728 = vmatprep.subr.bf16.mxu1 %v1842_v17 }
 0x13f   : > { %1680 = vmatprep.mubr.bf16.mxu1 %v636_v15 }
 0x140   : > { %1681 = vmatmul.mubr.bf16.gmra.mrb[12].mxu1 %v637_v14 }
 0x141   : > { %1729 = vmatpush3.bf16.msra.mxu1 %v1842_v17 }
 0x142   : > { %1730 = vmatprep.subr.bf16.mxu1 %v1843_v18 }
 0x145   : > { %1731 = vmatpush3.bf16.msra.mxu1 %v1843_v18 }
 0x1fb   : > { %v1670_v24 = vpop.f32.mrb[0].mxu1 }
 0x1fc   : > { %v752_v25 = vadd.f32 %v1670_v24, %v1523_v23  ;;  %v743_v26 = vpop.f32.mrb[1].mxu1 }
 0x1fd   : > { %v744_v27 = vadd.f32 %v1523_v23, %v743_v26  ;;  %v1671_v28 = vpop.f32.mrb[2].mxu1 }
 0x1fe   : > { %v755_v29 = vadd.f32 %v1671_v28, %v1523_v23  ;;  %v746_v30 = vpop.f32.mrb[3].mxu1  ;;  %v808_v32 = vmax.f32 %v752_v25, 0.0 }
 0x1ff   : > { %v747_v31 = vadd.f32 %v1523_v23, %v746_v30  ;;  %v806_v34 = vmax.f32 %v744_v27, 0.0 }
 0x200   : > { %v809_v33 = vmax.f32 %v755_v29, 0.0 }
 0x201   : > { %v807_v35 = vmax.f32 %v747_v31, 0.0 }
 0x202   : > { %v823_v36 = vpack.c.bf16 %v809_v33, %v808_v32 }
 0x203   : > { %v822_v37 = vpack.c.bf16 %v807_v35, %v806_v34  ;;  %v1674_v38 = vpop.f32.mrb[4].mxu1 }
 0x204   : > { %v768_v39 = vadd.f32 %v1674_v38, %v1523_v23  ;;  %v759_v40 = vpop.f32.mrb[5].mxu1 }
 0x205   : > { %v760_v41 = vadd.f32 %v1523_v23, %v759_v40  ;;  %v1675_v42 = vpop.f32.mrb[6].mxu1  ;;  %1700 = vmatprep.mubr.bf16.mxu0 %v822_v37 }
 0x206   : > { %v771_v43 = vadd.f32 %v1675_v42, %v1523_v23  ;;  %v762_v44 = vpop.f32.mrb[7].mxu1  ;;  %1701 = vmatmul.mubr.bf16.vlgmr.msra.gmra.mrb[16].mxu0 %v823_v36  ;;  %v812_v46 = vmax.f32 %v768_v39, 0.0 }
 0x207   : > { %v763_v45 = vadd.f32 %v1523_v23, %v762_v44  ;;  %v810_v48 = vmax.f32 %v760_v41, 0.0  ;;  %1749 = vmatpush3.bf16.msra.mxu0 %v1844_v19 }
 0x208   : > { %v813_v47 = vmax.f32 %v771_v43, 0.0  ;;  %1750 = vmatprep.subr.bf16.mxu0 %v1845_v20 }
 0x209   : > { %v811_v49 = vmax.f32 %v763_v45, 0.0 }
 0x20a   : > { %v825_v50 = vpack.c.bf16 %v813_v47, %v812_v46 }
 0x20b   : > { %v824_v51 = vpack.c.bf16 %v811_v49, %v810_v48  ;;  %v1678_v52 = vpop.f32.mrb[8].mxu1  ;;  %1751 = vmatpush3.bf16.msra.mxu0 %v1845_v20 }
 0x20c   : > { %v784_v53 = vadd.f32 %v1678_v52, %v1523_v23  ;;  %v775_v54 = vpop.f32.mrb[9].mxu1  ;;  %1752 = vmatprep.subr.bf16.mxu0 %v1846_v21 }
 0x20d   : > { %v776_v55 = vadd.f32 %v1523_v23, %v775_v54  ;;  %v1679_v56 = vpop.f32.mrb[10].mxu1  ;;  %1704 = vmatprep.mubr.bf16.mxu0 %v824_v51 }
 0x20e   : > { %v787_v57 = vadd.f32 %v1679_v56, %v1523_v23  ;;  %v778_v58 = vpop.f32.mrb[11].mxu1  ;;  %1705 = vmatmul.mubr.bf16.gmra.mrb[20].mxu0 %v825_v50  ;;  %v816_v60 = vmax.f32 %v784_v53, 0.0 }
 0x20f   : > { %v779_v59 = vadd.f32 %v1523_v23, %v778_v58  ;;  %v814_v62 = vmax.f32 %v776_v55, 0.0  ;;  %1753 = vmatpush3.bf16.msra.mxu0 %v1846_v21 }
 0x210   : > { %v817_v61 = vmax.f32 %v787_v57, 0.0  ;;  %1754 = vmatprep.subr.bf16.mxu0 %v1847_v22 }
 0x211   : > { %v815_v63 = vmax.f32 %v779_v59, 0.0 }
 0x212   : > { %v827_v0 = vpack.c.bf16 %v817_v61, %v816_v60 }
 0x213   : > { %v826_v1 = vpack.c.bf16 %v815_v63, %v814_v62  ;;  %v1682_v2 = vpop.f32.mrb[12].mxu1  ;;  %1755 = vmatpush3.bf16.msra.mxu0 %v1847_v22 }
 0x214   : > { %v800_v3 = vadd.f32 %v1682_v2, %v1523_v23  ;;  %v791_v4 = vpop.f32.mrb[13].mxu1 }
 0x215   : > { %v792_v5 = vadd.f32 %v1523_v23, %v791_v4  ;;  %v1683_v6 = vpop.f32.mrb[14].mxu1  ;;  %1708 = vmatprep.mubr.bf16.mxu0 %v826_v1 }
 0x216   : > { %v803_v7 = vadd.f32 %v1683_v6, %v1523_v23  ;;  %v794_v8 = vpop.f32.mrb[15].mxu1  ;;  %1709 = vmatmul.mubr.bf16.gmra.mrb[24].mxu0 %v827_v0  ;;  %v820_v10 = vmax.f32 %v800_v3, 0.0 }
 0x217   : > { %v795_v9 = vadd.f32 %v1523_v23, %v794_v8  ;;  %v818_v12 = vmax.f32 %v792_v5, 0.0  ;;  %v2212_v23 = vld [vmem:[%s2267_s6] ss:$0 sm:$0xff] }
 0x218   : > { %v821_v11 = vmax.f32 %v803_v7, 0.0 }
 0x219   : > { %v819_v13 = vmax.f32 %v795_v9, 0.0 }
 0x21a   : > { %v829_v14 = vpack.c.bf16 %v821_v11, %v820_v10 }
 0x21b   : > { %v828_v15 = vpack.c.bf16 %v819_v13, %v818_v12 }
 0x21d   : > { %1712 = vmatprep.mubr.bf16.mxu0 %v828_v15 }
 0x21e   : > { %1713 = vmatmul.mubr.bf16.gmra.mrb[28].mxu0 %v829_v14 }
 0x2d9   : > { %v1702_v24 = vpop.f32.mrb[16].mxu0 }
 0x2da   : > { %v944_v25 = vadd.f32 %v1702_v24, %v2212_v23  ;;  %v935_v26 = vpop.f32.mrb[17].mxu0 }
 0x2db   : > { %v936_v27 = vadd.f32 %v2212_v23, %v935_v26  ;;  %v1703_v28 = vpop.f32.mrb[18].mxu0 }
 0x2dc   : > { %v1000_v29 = vmul.f32 0.01, %v944_v25  ;;  %v947_v30 = vadd.f32 %v1703_v28, %v2212_v23  ;;  %v938_v31 = vpop.f32.mrb[19].mxu0 }
 0x2dd   : > { %v998_v32 = vmul.f32 0.01, %v936_v27  ;;  %v939_v33 = vadd.f32 %v2212_v23, %v938_v31 }
 0x2de   : > { %v1001_v34 = vmul.f32 0.01, %v947_v30  ;;  %v1016_v36 = vmax.f32 %v944_v25, %v1000_v29 }
 0x2df   : > { %v999_v35 = vmul.f32 0.01, %v939_v33  ;;  %v1014_v38 = vmax.f32 %v936_v27, %v998_v32 }
 0x2e0   : > { %v1017_v37 = vmax.f32 %v947_v30, %v1001_v34  ;;  %v1849_v34 = vld [vmem:[#allocation4 + $0x28] sm:$0xff]  }
 0x2e1   : > { %v1015_v39 = vmax.f32 %v939_v33, %v999_v35  ;;  %v1706_v40 = vpop.f32.mrb[20].mxu0  ;;  %v1848_v33 = vld [vmem:[#allocation4 + $0x20] sm:$0xff]   ;;  %v1850_v35 = vld [vmem:[#allocation4 + $0x30] sm:$0xff]  }
 0x2e2   : > { %v1031_v41 = vpack.c.bf16 %v1017_v37, %v1016_v36  ;;  %v960_v42 = vadd.f32 %v1706_v40, %v2212_v23  ;;  %v951_v43 = vpop.f32.mrb[21].mxu0  ;;  %1756 = vmatprep.subr.bf16.mxu0 %v1848_v33  ;;  %v1541_v36 = vld [vmem:[%s2269_s8] ss:$0 sm:$0xff] }
 0x2e3   : > { %v952_v44 = vadd.f32 %v2212_v23, %v951_v43  ;;  %v1707_v45 = vpop.f32.mrb[22].mxu0  ;;  %v1030_v46 = vpack.c.bf16 %v1015_v39, %v1014_v38  ;;  %1757 = vmatpush3.bf16.msra.mxu0 %v1848_v33 }
 0x2e4   : > { %v1004_v47 = vmul.f32 0.01, %v960_v42  ;;  %v963_v48 = vadd.f32 %v1707_v45, %v2212_v23  ;;  %v954_v49 = vpop.f32.mrb[23].mxu0  ;;  %1758 = vmatprep.subr.bf16.mxu0 %v1849_v34 }
 0x2e5   : > { %v1002_v50 = vmul.f32 0.01, %v952_v44  ;;  %v955_v51 = vadd.f32 %v2212_v23, %v954_v49  ;;  %1732 = vmatprep.mubr.bf16.mxu1 %v1030_v46 }
 0x2e6   : > { %v1005_v52 = vmul.f32 0.01, %v963_v48  ;;  %1733 = vmatmul.mubr.bf16.vlgmr.msra.gmra.mrb[16].mxu1 %v1031_v41  ;;  %v1020_v54 = vmax.f32 %v960_v42, %v1004_v47 }
 0x2e7   : > { %v1003_v53 = vmul.f32 0.01, %v955_v51  ;;  %v1018_v56 = vmax.f32 %v952_v44, %v1002_v50  ;;  %1759 = vmatpush3.bf16.msra.mxu0 %v1849_v34 }
 0x2e8   : > { %v1021_v55 = vmax.f32 %v963_v48, %v1005_v52  ;;  %1760 = vmatprep.subr.bf16.mxu0 %v1850_v35 }
 0x2e9   : > { %v1019_v57 = vmax.f32 %v955_v51, %v1003_v53  ;;  %v1710_v58 = vpop.f32.mrb[24].mxu0 }
 0x2ea   : > { %v976_v59 = vadd.f32 %v1710_v58, %v2212_v23  ;;  %v967_v60 = vpop.f32.mrb[25].mxu0  ;;  %v1033_v61 = vpack.c.bf16 %v1021_v55, %v1020_v54 }
 0x2eb   : > { %v968_v62 = vadd.f32 %v2212_v23, %v967_v60  ;;  %v1711_v63 = vpop.f32.mrb[26].mxu0  ;;  %v1032_v0 = vpack.c.bf16 %v1019_v57, %v1018_v56  ;;  %1761 = vmatpush3.bf16.msra.mxu0 %v1850_v35 }
 0x2ec   : > { %v1008_v1 = vmul.f32 0.01, %v976_v59  ;;  %v979_v2 = vadd.f32 %v1711_v63, %v2212_v23  ;;  %v970_v3 = vpop.f32.mrb[27].mxu0 }
 0x2ed   : > { %v1006_v4 = vmul.f32 0.01, %v968_v62  ;;  %v971_v5 = vadd.f32 %v2212_v23, %v970_v3  ;;  %1736 = vmatprep.mubr.bf16.mxu1 %v1032_v0 }
 0x2ee   : > { %v1009_v6 = vmul.f32 0.01, %v979_v2  ;;  %1737 = vmatmul.mubr.bf16.gmra.mrb[20].mxu1 %v1033_v61  ;;  %v1024_v8 = vmax.f32 %v976_v59, %v1008_v1 }
 0x2ef   : > { %v1007_v7 = vmul.f32 0.01, %v971_v5  ;;  %v1022_v10 = vmax.f32 %v968_v62, %v1006_v4 }
 0x2f0   : > { %v1025_v9 = vmax.f32 %v979_v2, %v1009_v6 }
 0x2f1   : > { %v1023_v11 = vmax.f32 %v971_v5, %v1007_v7  ;;  %v1714_v12 = vpop.f32.mrb[28].mxu0 }
 0x2f2   : > { %v992_v13 = vadd.f32 %v1714_v12, %v2212_v23  ;;  %v983_v14 = vpop.f32.mrb[29].mxu0  ;;  %v1035_v15 = vpack.c.bf16 %v1025_v9, %v1024_v8 }
 0x2f3   : > { %v984_v16 = vadd.f32 %v2212_v23, %v983_v14  ;;  %v1715_v17 = vpop.f32.mrb[30].mxu0  ;;  %v1034_v18 = vpack.c.bf16 %v1023_v11, %v1022_v10 }
 0x2f4   : > { %v1012_v19 = vmul.f32 0.01, %v992_v13  ;;  %v995_v20 = vadd.f32 %v1715_v17, %v2212_v23  ;;  %v986_v21 = vpop.f32.mrb[31].mxu0 }
 0x2f5   : > { %v1010_v22 = vmul.f32 0.01, %v984_v16  ;;  %v987_v24 = vadd.f32 %v2212_v23, %v986_v21  ;;  %1740 = vmatprep.mubr.bf16.mxu1 %v1034_v18  ;;  %v1851_v23 = vld [vmem:[#allocation4 + $0x38] sm:$0xff]  }
 0x2f6   : > { %v1013_v25 = vmul.f32 0.01, %v995_v20  ;;  %1741 = vmatmul.mubr.bf16.gmra.mrb[24].mxu1 %v1035_v15  ;;  %v1028_v27 = vmax.f32 %v992_v13, %v1012_v19  ;;  %1762 = vmatprep.subr.bf16.mxu0 %v1851_v23 }
 0x2f7   : > { %v1011_v26 = vmul.f32 0.01, %v987_v24  ;;  %v1026_v29 = vmax.f32 %v984_v16, %v1010_v22  ;;  %1763 = vmatpush3.bf16.msra.mxu0 %v1851_v23 }
 0x2f8   : > { %v1029_v28 = vmax.f32 %v995_v20, %v1013_v25 }
 0x2f9   : > { %v1027_v30 = vmax.f32 %v987_v24, %v1011_v26 }
 0x2fa   : > { %v1037_v31 = vpack.c.bf16 %v1029_v28, %v1028_v27 }
 0x2fb   : > { %v1036_v32 = vpack.c.bf16 %v1027_v30, %v1026_v29  ;;  %v1550_v30 = vld [vmem:[%s2271_s10] ss:$0 sm:$0xff] }
 0x2fd   : > { %1744 = vmatprep.mubr.bf16.mxu1 %v1036_v32 }
 0x2fe   : > { %1745 = vmatmul.mubr.bf16.gmra.mrb[28].mxu1 %v1037_v31 }
 0x3b9   : > { %v1734_v37 = vpop.f32.mrb[16].mxu1 }
 0x3ba   : > { %v1152_v38 = vadd.f32 %v1734_v37, %v1541_v36  ;;  %v1143_v39 = vpop.f32.mrb[17].mxu1 }
 0x3bb   : > { %v1144_v40 = vadd.f32 %v1541_v36, %v1143_v39  ;;  %v1735_v41 = vpop.f32.mrb[18].mxu1 }
 0x3bc   : > { %1852 = vtanh.f32 %v1152_v38  ;;  %v1155_v42 = vadd.f32 %v1735_v41, %v1541_v36  ;;  %v1146_v43 = vpop.f32.mrb[19].mxu1 }
 0x3bd   : > { %1854 = vtanh.f32 %v1144_v40  ;;  %v1147_v44 = vadd.f32 %v1541_v36, %v1146_v43 }
 0x3be   : > { %1856 = vtanh.f32 %v1155_v42 }
 0x3bf   : > { %1858 = vtanh.f32 %v1147_v44 }
 0x3c1   : > { %v1738_v45 = vpop.f32.mrb[20].mxu1 }
 0x3c2   : > { %v1168_v46 = vadd.f32 %v1738_v45, %v1541_v36  ;;  %v1159_v47 = vpop.f32.mrb[21].mxu1 }
 0x3c3   : > { %v1160_v48 = vadd.f32 %v1541_v36, %v1159_v47  ;;  %v1739_v49 = vpop.f32.mrb[22].mxu1 }
 0x3c4   : > { %1860 = vtanh.f32 %v1168_v46  ;;  %v1171_v50 = vadd.f32 %v1739_v49, %v1541_v36  ;;  %v1162_v51 = vpop.f32.mrb[23].mxu1 }
 0x3c5   : > { %1862 = vtanh.f32 %v1160_v48  ;;  %v1163_v52 = vadd.f32 %v1541_v36, %v1162_v51 }
 0x3c6   : > { %v1853_v53 = vpop.eup %1852  ;;  %1864 = vtanh.f32 %v1171_v50 }
 0x3c7   : > { %v1855_v54 = vpop.eup %1854  ;;  %1866 = vtanh.f32 %v1163_v52 }
 0x3c8   : > { %v1857_v55 = vpop.eup %1856 }
 0x3c9   : > { %v1859_v56 = vpop.eup %1858  ;;  %v1742_v57 = vpop.f32.mrb[24].mxu1  ;;  %v1223_v58 = vpack.c.bf16 %v1857_v55, %v1853_v53 }
 0x3ca   : > { %v1184_v59 = vadd.f32 %v1742_v57, %v1541_v36  ;;  %v1175_v60 = vpop.f32.mrb[25].mxu1  ;;  %v1222_v61 = vpack.c.bf16 %v1859_v56, %v1855_v54 }
 0x3cb   : > { %v1176_v62 = vadd.f32 %v1541_v36, %v1175_v60  ;;  %v1743_v63 = vpop.f32.mrb[26].mxu1 }
 0x3cc   : > { %1868 = vtanh.f32 %v1184_v59  ;;  %v1187_v0 = vadd.f32 %v1743_v63, %v1541_v36  ;;  %v1178_v1 = vpop.f32.mrb[27].mxu1  ;;  %1764 = vmatprep.mubr.bf16.mxu0 %v1222_v61 }
 0x3cd   : > { %1870 = vtanh.f32 %v1176_v62  ;;  %v1179_v2 = vadd.f32 %v1541_v36, %v1178_v1  ;;  %1765 = vmatmul.mubr.bf16.vlgmr.msra.gmra.mrb[32].mxu0 %v1223_v58 }
 0x3ce   : > { %v1861_v3 = vpop.eup %1860  ;;  %1872 = vtanh.f32 %v1187_v0 }
 0x3cf   : > { %v1863_v4 = vpop.eup %1862  ;;  %1874 = vtanh.f32 %v1179_v2 }
 0x3d0   : > { %v1865_v5 = vpop.eup %1864 }
 0x3d1   : > { %v1867_v6 = vpop.eup %1866  ;;  %v1746_v7 = vpop.f32.mrb[28].mxu1  ;;  %v1225_v8 = vpack.c.bf16 %v1865_v5, %v1861_v3 }
 0x3d2   : > { %v1200_v9 = vadd.f32 %v1746_v7, %v1541_v36  ;;  %v1191_v10 = vpop.f32.mrb[29].mxu1  ;;  %v1224_v11 = vpack.c.bf16 %v1867_v6, %v1863_v4 }
 0x3d3   : > { %v1192_v12 = vadd.f32 %v1541_v36, %v1191_v10  ;;  %v1747_v13 = vpop.f32.mrb[30].mxu1 }
 0x3d4   : > { %1876 = vtanh.f32 %v1200_v9  ;;  %v1203_v14 = vadd.f32 %v1747_v13, %v1541_v36  ;;  %v1194_v15 = vpop.f32.mrb[31].mxu1  ;;  %1768 = vmatprep.mubr.bf16.mxu0 %v1224_v11 }
 0x3d5   : > { %1878 = vtanh.f32 %v1192_v12  ;;  %v1195_v16 = vadd.f32 %v1541_v36, %v1194_v15  ;;  %1769 = vmatmul.mubr.bf16.gmra.mrb[36].mxu0 %v1225_v8 }
 0x3d6   : > { %v1869_v17 = vpop.eup %1868  ;;  %1880 = vtanh.f32 %v1203_v14 }
 0x3d7   : > { %v1871_v18 = vpop.eup %1870  ;;  %1882 = vtanh.f32 %v1195_v16 }
 0x3d8   : > { %v1873_v19 = vpop.eup %1872 }
 0x3d9   : > { %v1875_v20 = vpop.eup %1874  ;;  %v1227_v21 = vpack.c.bf16 %v1873_v19, %v1869_v17 }
 0x3da   : > { %v1226_v22 = vpack.c.bf16 %v1875_v20, %v1871_v18 }
 0x3dc   : > { %1772 = vmatprep.mubr.bf16.mxu0 %v1226_v22 }
 0x3dd   : > { %1773 = vmatmul.mubr.bf16.gmra.mrb[40].mxu0 %v1227_v21 }
 0x3de   : > { %v1877_v24 = vpop.eup %1876 }
 0x3df   : > { %v1879_v25 = vpop.eup %1878 }
 0x3e0   : > { %v1881_v26 = vpop.eup %1880 }
 0x3e1   : > { %v1883_v27 = vpop.eup %1882  ;;  %v1229_v28 = vpack.c.bf16 %v1881_v26, %v1877_v24 }
 0x3e2   : > { %v1228_v29 = vpack.c.bf16 %v1883_v27, %v1879_v25 }
 0x3e4   : > { %1776 = vmatprep.mubr.bf16.mxu0 %v1228_v29 }
 0x3e5   : > { %1777 = vmatmul.mubr.bf16.gmra.mrb[44].mxu0 %v1229_v28 }
 0x4a0   : > { %v1766_v31 = vpop.f32.mrb[32].mxu0 }
 0x4a1   : > { %v1344_v32 = vadd.f32 %v1766_v31, %v1550_v30  ;;  %v1335_v33 = vpop.f32.mrb[33].mxu0 }
 0x4a2   : > { %v1336_v34 = vadd.f32 %v1550_v30, %v1335_v33  ;;  %v1767_v35 = vpop.f32.mrb[34].mxu0 }
 0x4a3   : > { %1400 = vst [vmem:[%s2240_s20 + $0x10] sm:$0xff] %v1344_v32  ;;  %v1347_v23 = vadd.f32 %v1767_v35, %v1550_v30  ;;  %v1338_v36 = vpop.f32.mrb[35].mxu0 }
 0x4a4   : > { %1398 = vst [vmem:[%s2240_s20] sm:$0xff] %v1336_v34  ;;  %v1339_v37 = vadd.f32 %v1550_v30, %v1338_v36 }
 0x4a5   : > { %1401 = vst [vmem:[%s2240_s20 + $0x18] sm:$0xff] %v1347_v23 }
 0x4a6   : > { %1399 = vst [vmem:[%s2240_s20 + $0x8] sm:$0xff] %v1339_v37 }
 0x4a8   : > { %v1770_v38 = vpop.f32.mrb[36].mxu0 }
 0x4a9   : > { %v1360_v39 = vadd.f32 %v1770_v38, %v1550_v30  ;;  %v1351_v40 = vpop.f32.mrb[37].mxu0 }
 0x4aa   : > { %v1352_v41 = vadd.f32 %v1550_v30, %v1351_v40  ;;  %v1771_v42 = vpop.f32.mrb[38].mxu0 }
 0x4ab   : > { %1404 = vst [vmem:[%s2240_s20 + $0x30] sm:$0xff] %v1360_v39  ;;  %v1363_v43 = vadd.f32 %v1771_v42, %v1550_v30  ;;  %v1354_v44 = vpop.f32.mrb[39].mxu0 }
 0x4ac   : > { %1402 = vst [vmem:[%s2240_s20 + $0x20] sm:$0xff] %v1352_v41  ;;  %v1355_v45 = vadd.f32 %v1550_v30, %v1354_v44 }
 0x4ad   : > { %1405 = vst [vmem:[%s2240_s20 + $0x38] sm:$0xff] %v1363_v43 }
 0x4ae   : > { %1403 = vst [vmem:[%s2240_s20 + $0x28] sm:$0xff] %v1355_v45 }
 0x4b0   : > { %v1774_v46 = vpop.f32.mrb[40].mxu0 }
 0x4b1   : > { %v1376_v47 = vadd.f32 %v1774_v46, %v1550_v30  ;;  %v1367_v48 = vpop.f32.mrb[41].mxu0 }
 0x4b2   : > { %v1368_v49 = vadd.f32 %v1550_v30, %v1367_v48  ;;  %v1775_v50 = vpop.f32.mrb[42].mxu0 }
 0x4b3   : > { %1408 = vst [vmem:[%s2240_s20 + $0x50] sm:$0xff] %v1376_v47  ;;  %v1379_v51 = vadd.f32 %v1775_v50, %v1550_v30  ;;  %v1370_v52 = vpop.f32.mrb[43].mxu0 }
 0x4b4   : > { %1406 = vst [vmem:[%s2240_s20 + $0x40] sm:$0xff] %v1368_v49  ;;  %v1371_v53 = vadd.f32 %v1550_v30, %v1370_v52 }
 0x4b5   : > { %1409 = vst [vmem:[%s2240_s20 + $0x58] sm:$0xff] %v1379_v51 }
 0x4b6   : > { %1407 = vst [vmem:[%s2240_s20 + $0x48] sm:$0xff] %v1371_v53 }
 0x4b8   : > { %v1778_v54 = vpop.f32.mrb[44].mxu0 }
 0x4b9   : > { %v1392_v55 = vadd.f32 %v1778_v54, %v1550_v30  ;;  %v1383_v56 = vpop.f32.mrb[45].mxu0 }
 0x4ba   : > { %v1384_v57 = vadd.f32 %v1550_v30, %v1383_v56  ;;  %v1779_v58 = vpop.f32.mrb[46].mxu0 }
 0x4bb   : > { %1412 = vst [vmem:[%s2240_s20 + $0x70] sm:$0xff] %v1392_v55  ;;  %v1395_v59 = vadd.f32 %v1779_v58, %v1550_v30  ;;  %v1386_v60 = vpop.f32.mrb[47].mxu0 }
 0x4bc   : > { %1410 = vst [vmem:[%s2240_s20 + $0x60] sm:$0xff] %v1384_v57  ;;  %v1387_v61 = vadd.f32 %v1550_v30, %v1386_v60 }
 0x4bd   : > { %1413 = vst [vmem:[%s2240_s20 + $0x78] sm:$0xff] %v1395_v59 }
 0x4be   : > { %1411 = vst [vmem:[%s2240_s20 + $0x68] sm:$0xff] %v1387_v61 }
 0x4bf PF: > { %s23_s17 = sadd.s32 1, %s1954_s17  }
 0x4c0   : > { %p20_p5 = scmp.ge.s32.totalorder %s23_s17, 4  }
 0x4c2   :  { %22 = sbr.rel (!%p20_p5) target bundleno = 2 (0x2), region = 103 }
 0x4c9   :  { %1436 = vsyncpa [#allocation3], 1 }
 0x4ca   :  { %1438 = vsyncpa [#allocation3 + $0x1], 1 }
 0x4cb   :  { %1439 = vsyncpa [#allocation5], 1 }

</bundles_post_ra>
